<compile_context>
chip_gen: v5e
topology: v5e:2x2
jax: 0.10.0
libtpu: 0.0.40
codegen_flags: <defaults>
</compile_context>

<pallas_src>
import jax
import jax.numpy as jnp
from jax.experimental import pallas as pl
from jax.experimental.pallas import tpu as pltpu

# --- scaled-down config (defaults in the module are 512/64/112/8; shrunk for test) ---
RADIUS = 16.0
N_SLOT = 16
N_HEAD = 4
DIM = 32          # dim_input == dim
DIM_QUERY = 16
DIM_MEM = 32
DIM_OUTPUT = 32   # must equal DIM_MEM when diff_key_value=False (norm3 applies directly)
LN_EPS = 1e-5     # torch.nn.LayerNorm default eps
NORM_EPS = 1e-12  # torch F.normalize default eps


def memory_kernel(q_ref, v_ref,
                  qw_ref, qb_ref, kbd_ref, eq_ref, eqT_ref, es_ref, esT_ref,
                  w_ref, ob_ref, n2g_ref, n2b_ref,
                  vw_ref, vb_ref, memnT_ref, mem_ref, n3g_ref, n3b_ref,
                  f_pred_ref, f_recon_ref, loss_ref):
    f32 = jnp.float32
    bf16 = jnp.bfloat16
    eps2 = NORM_EPS * NORM_EPS

    q = q_ref[...]   # (T, DIM) bf16
    v = v_ref[...]   # (T, DIM) bf16

    # ---------------- prediction path ----------------
    # q_proj: bf16 x bf16 -> f32 accumulate
    qp = jnp.dot(q, qw_ref[...], preferred_element_type=f32) + qb_ref[...]      # (T, H*Dq)

    # per-head L2 normalize via segment sum-of-squares (indicator matmuls, f32)
    ssq = jnp.dot(qp * qp, eq_ref[...], preferred_element_type=f32)             # (T, H)
    inv_n = jax.lax.rsqrt(jnp.maximum(ssq, eps2))       # == 1 / max(||x||, eps)
    qp_n = qp * jnp.dot(inv_n, eqT_ref[...], preferred_element_type=f32)        # (T, H*Dq)

    # all-head slot similarities via block-diagonal normalized-key matrix
    sim = jnp.dot(qp_n.astype(bf16), kbd_ref[...], preferred_element_type=f32)  # (T, H*Ns)

    # per-head softmax over slots; sim <= 1, so subtracting RADIUS is a stable bound
    e = jnp.exp(RADIUS * sim - RADIUS)
    denom = jnp.dot(e, es_ref[...], preferred_element_type=f32)                 # (T, H)
    inv_d = pl.reciprocal(denom, approx=True)
    addr = e * jnp.dot(inv_d, esT_ref[...], preferred_element_type=f32)         # (T, H*Ns)

    # fused (addr @ mem) @ out_proj == addr @ W, W precomputed in the wrapper
    ao = jnp.dot(addr.astype(bf16), w_ref[...], preferred_element_type=f32) + ob_ref[...]
    mu = jnp.mean(ao, axis=-1, keepdims=True)
    var = jnp.mean((ao - mu) ** 2, axis=-1, keepdims=True)
    ao = (ao - mu) * jax.lax.rsqrt(var + LN_EPS) * n2g_ref[...] + n2b_ref[...]
    f_pred_ref[...] = ao.astype(f_pred_ref.dtype)

    # ---------------- reconstruction path ----------------
    vp = jnp.dot(v, vw_ref[...], preferred_element_type=f32) + vb_ref[...]      # (T, Dm)
    vp_n = vp * jax.lax.rsqrt(jnp.maximum(
        jnp.sum(vp * vp, axis=-1, keepdims=True), eps2))
    vsim = jnp.dot(vp_n.astype(bf16), memnT_ref[...], preferred_element_type=f32)  # (T, Ns)
    ev = jnp.exp(RADIUS * vsim - RADIUS)
    vaddr = ev * pl.reciprocal(jnp.sum(ev, axis=-1, keepdims=True), approx=True)
    arecon = jnp.dot(vaddr.astype(bf16), mem_ref[...], preferred_element_type=f32)  # (T, Dm)

    # TODO(synk): calculate_loss() is not defined in the provided source; 'cosine'
    # loss assumed: per-row (1 - cosine_similarity(attention_recon, value)), averaged
    # over rows in the wrapper.
    v32 = v.astype(f32)
    ar_n = arecon * jax.lax.rsqrt(jnp.maximum(
        jnp.sum(arecon * arecon, axis=-1, keepdims=True), eps2))
    v_n = v32 * jax.lax.rsqrt(jnp.maximum(
        jnp.sum(v32 * v32, axis=-1, keepdims=True), eps2))
    loss_ref[...] = 1.0 - jnp.sum(ar_n * v_n, axis=-1, keepdims=True)            # (T, 1)

    # norm3 (LayerNorm) on reconstruction (after loss, matching PyTorch order)
    mu3 = jnp.mean(arecon, axis=-1, keepdims=True)
    var3 = jnp.mean((arecon - mu3) ** 2, axis=-1, keepdims=True)
    arecon = (arecon - mu3) * jax.lax.rsqrt(var3 + LN_EPS) * n3g_ref[...] + n3b_ref[...]
    f_recon_ref[...] = arecon.astype(f_recon_ref.dtype)


def init_params(rng):
    ks = jax.random.split(rng, 8)
    p = {
        # nn.Parameter ~ Normal(0, 0.5)
        "key":   0.5 * jax.random.normal(ks[0], (N_HEAD * N_SLOT, DIM_QUERY), jnp.float32),
        "value": 0.5 * jax.random.normal(ks[1], (N_SLOT, DIM_MEM), jnp.float32),
        # Linear layers stored as (in, out); biases as (1, out) so everything is 2-D
        "q_w":   0.05 * jax.random.normal(ks[2], (DIM, N_HEAD * DIM_QUERY), jnp.float32),
        "q_b":   jnp.zeros((1, N_HEAD * DIM_QUERY), jnp.float32),
        "out_w": 0.05 * jax.random.normal(ks[3], (N_HEAD * DIM_MEM, DIM_OUTPUT), jnp.float32),
        "out_b": jnp.zeros((1, DIM_OUTPUT), jnp.float32),
        "v_w":   0.05 * jax.random.normal(ks[4], (DIM, DIM_MEM), jnp.float32),
        "v_b":   jnp.zeros((1, DIM_MEM), jnp.float32),
        # LayerNorm affine params
        "n2_g":  jnp.ones((1, DIM_OUTPUT), jnp.float32),
        "n2_b":  jnp.zeros((1, DIM_OUTPUT), jnp.float32),
        "n3_g":  jnp.ones((1, DIM_OUTPUT), jnp.float32),
        "n3_b":  jnp.zeros((1, DIM_OUTPUT), jnp.float32),
    }
    return p


def memory_forward(query, value, params, row_tile=8):
    B, S, C = query.shape
    assert C == DIM
    BS = B * S
    assert row_tile % 8 == 0 and BS % row_tile == 0, "row tile must be 8-aligned and divide B*S"
    num_tiles = BS // row_tile

    f32, bf16 = jnp.float32, jnp.bfloat16
    H, Ns, Dq, Dm, Dout = N_HEAD, N_SLOT, DIM_QUERY, DIM_MEM, DIM_OUTPUT

    # activations in bf16 (halves HBM traffic / DMA bytes)
    q2 = query.reshape(BS, C).astype(bf16)
    v2 = value.reshape(BS, C).astype(bf16)

    key = params["key"].astype(f32)    # (H*Ns, Dq)
    mem = params["value"].astype(f32)  # (Ns, Dm)

    # ---- parameter-only precompute, hoisted out of the kernel (plain XLA) ----
    kn = key.reshape(H, Ns, Dq)
    kn = kn / jnp.maximum(jnp.sqrt(jnp.sum(kn * kn, axis=2, keepdims=True)), NORM_EPS)
    k_bd = jnp.zeros((H * Dq, H * Ns), f32)            # block-diagonal normalized keys (Dq x Ns blocks)
    for h in range(H):
        k_bd = k_bd.at[h * Dq:(h + 1) * Dq, h * Ns:(h + 1) * Ns].set(kn[h].T)

    ow3 = params["out_w"].astype(f32).reshape(H, Dm, Dout)
    w_fused = jnp.einsum("sd,hdo->hso", mem, ow3).reshape(H * Ns, Dout)   # (H*Ns, Dout)

    mem_norm = mem / jnp.maximum(jnp.sqrt(jnp.sum(mem * mem, axis=1, keepdims=True)), NORM_EPS)
    contrastive_loss = 0.01 * jnp.sum(
        jnp.abs(jnp.eye(Ns, dtype=f32) - mem_norm @ mem_norm.T))          # parameter-only

    # segment indicator matrices (per-head sum reductions / broadcasts)
    eq = jnp.repeat(jnp.eye(H, dtype=f32), Dq, axis=0)   # (H*Dq, H)
    es = jnp.repeat(jnp.eye(H, dtype=f32), Ns, axis=0)   # (H*Ns, H)

    inputs = (
        q2, v2,
        params["q_w"].astype(bf16), params["q_b"].astype(f32),
        k_bd.astype(bf16), eq, eq.T, es, es.T,
        w_fused.astype(bf16), params["out_b"].astype(f32),
        params["n2_g"].astype(f32), params["n2_b"].astype(f32),
        params["v_w"].astype(bf16), params["v_b"].astype(f32),
        mem_norm.T.astype(bf16), mem.astype(bf16),
        params["n3_g"].astype(f32), params["n3_b"].astype(f32),
    )

    rows = lambda i: (i, 0)
    const = lambda i: (0, 0)

    in_specs = [
        pl.BlockSpec((row_tile, C), rows),   # q2 (row-tiled)
        pl.BlockSpec((row_tile, C), rows),   # v2 (row-tiled)
    ] + [pl.BlockSpec(a.shape, const) for a in inputs[2:]]   # weights: VMEM-resident

    out_shapes = (
        jax.ShapeDtypeStruct((BS, Dout), f32),   # f_predict (flat)
        jax.ShapeDtypeStruct((BS, Dout), f32),   # f_target_recon (flat)
        jax.ShapeDtypeStruct((BS, 1), f32),      # per-row recon loss terms
    )
    out_specs = (
        pl.BlockSpec((row_tile, Dout), rows),
        pl.BlockSpec((row_tile, Dout), rows),
        pl.BlockSpec((row_tile, 1), rows),
    )

    f_pred, f_recon, loss_rows = pl.pallas_call(
        memory_kernel,
        out_shape=out_shapes,
        grid=(num_tiles,),
        in_specs=in_specs,
        out_specs=out_specs,
        compiler_params=pltpu.CompilerParams(
            dimension_semantics=("parallel",)),
    )(*inputs)

    f_predict = f_pred.reshape(B, S, Dout)
    f_target_recon = f_recon.reshape(B, S, Dout)
    recon_loss = jnp.mean(loss_rows).reshape(1)
    zero = jnp.zeros((1,), f32)
    # (f_predict, f_target_recon, recon_loss, contrastive_loss,
    #  hypothesis_output, hypo_contrastive_loss, match_global_loss, kd_loss)
    return (f_predict, f_target_recon, recon_loss, contrastive_loss.reshape(1),
            None, zero, zero, zero)


if __name__ == "__main__":
    B, S = 2, 8
    rng = jax.random.PRNGKey(0)
    k_q, k_v, k_p = jax.random.split(rng, 3)
    query = jax.random.normal(k_q, (B, S, DIM), jnp.float32)
    value = jax.random.normal(k_v, (B, S, DIM), jnp.float32)
    params = init_params(k_p)

    outs = memory_forward(query, value, params, row_tile=8)
    # block on all array outputs (hypothesis_output is None for the default config)
    jax.block_until_ready([o for o in outs if o is not None])

    f_predict, f_target_recon = outs[0], outs[1]
    assert f_predict.shape == (B, S, DIM_OUTPUT)
    assert f_target_recon.shape == (B, S, DIM_OUTPUT)
    assert outs[2].shape == (1,) and outs[3].shape == (1,)
    print("KERNEL_OK")
</pallas_src>

<mosaic_0001>
module attributes {stable_mosaic.version = 11 : i64} {
  func.func @memory_kernel(%arg0: i32, %arg1: memref<8x32xbf16, #tpu.memory_space<vmem>>, %arg2: memref<8x32xbf16, #tpu.memory_space<vmem>>, %arg3: memref<32x64xbf16, #tpu.memory_space<vmem>>, %arg4: memref<1x64xf32, #tpu.memory_space<vmem>>, %arg5: memref<64x64xbf16, #tpu.memory_space<vmem>>, %arg6: memref<64x4xf32, #tpu.memory_space<vmem>>, %arg7: memref<4x64xf32, #tpu.memory_space<vmem>>, %arg8: memref<64x4xf32, #tpu.memory_space<vmem>>, %arg9: memref<4x64xf32, #tpu.memory_space<vmem>>, %arg10: memref<64x32xbf16, #tpu.memory_space<vmem>>, %arg11: memref<1x32xf32, #tpu.memory_space<vmem>>, %arg12: memref<1x32xf32, #tpu.memory_space<vmem>>, %arg13: memref<1x32xf32, #tpu.memory_space<vmem>>, %arg14: memref<32x32xbf16, #tpu.memory_space<vmem>>, %arg15: memref<1x32xf32, #tpu.memory_space<vmem>>, %arg16: memref<32x16xbf16, #tpu.memory_space<vmem>>, %arg17: memref<16x32xbf16, #tpu.memory_space<vmem>>, %arg18: memref<1x32xf32, #tpu.memory_space<vmem>>, %arg19: memref<1x32xf32, #tpu.memory_space<vmem>>, %arg20: memref<8x32xf32, #tpu.memory_space<vmem>>, %arg21: memref<8x32xf32, #tpu.memory_space<vmem>>, %arg22: memref<8x1xf32, #tpu.memory_space<vmem>>) attributes {dimension_semantics = [#tpu.dimension_semantics<parallel>], iteration_bounds = array<i64: 2>, scalar_prefetch = 0 : i64, scratch_operands = 0 : i64, tpu.core_type = #tpu.core_type<tc>, window_params = [{transform_indices = @transform_0, window_bounds = array<i64: 8, 32>}, {transform_indices = @transform_1, window_bounds = array<i64: 8, 32>}, {pipeline_mode = #tpu.pipeline_mode<synchronous>, transform_indices = @transform_2, window_bounds = array<i64: 32, 64>}, {pipeline_mode = #tpu.pipeline_mode<synchronous>, transform_indices = @transform_3, window_bounds = array<i64: 1, 64>}, {pipeline_mode = #tpu.pipeline_mode<synchronous>, transform_indices = @transform_4, window_bounds = array<i64: 64, 64>}, {pipeline_mode = #tpu.pipeline_mode<synchronous>, transform_indices = @transform_5, window_bounds = array<i64: 64, 4>}, {pipeline_mode = #tpu.pipeline_mode<synchronous>, transform_indices = @transform_6, window_bounds = array<i64: 4, 64>}, {pipeline_mode = #tpu.pipeline_mode<synchronous>, transform_indices = @transform_7, window_bounds = array<i64: 64, 4>}, {pipeline_mode = #tpu.pipeline_mode<synchronous>, transform_indices = @transform_8, window_bounds = array<i64: 4, 64>}, {pipeline_mode = #tpu.pipeline_mode<synchronous>, transform_indices = @transform_9, window_bounds = array<i64: 64, 32>}, {pipeline_mode = #tpu.pipeline_mode<synchronous>, transform_indices = @transform_10, window_bounds = array<i64: 1, 32>}, {pipeline_mode = #tpu.pipeline_mode<synchronous>, transform_indices = @transform_11, window_bounds = array<i64: 1, 32>}, {pipeline_mode = #tpu.pipeline_mode<synchronous>, transform_indices = @transform_12, window_bounds = array<i64: 1, 32>}, {pipeline_mode = #tpu.pipeline_mode<synchronous>, transform_indices = @transform_13, window_bounds = array<i64: 32, 32>}, {pipeline_mode = #tpu.pipeline_mode<synchronous>, transform_indices = @transform_14, window_bounds = array<i64: 1, 32>}, {pipeline_mode = #tpu.pipeline_mode<synchronous>, transform_indices = @transform_15, window_bounds = array<i64: 32, 16>}, {pipeline_mode = #tpu.pipeline_mode<synchronous>, transform_indices = @transform_16, window_bounds = array<i64: 16, 32>}, {pipeline_mode = #tpu.pipeline_mode<synchronous>, transform_indices = @transform_17, window_bounds = array<i64: 1, 32>}, {pipeline_mode = #tpu.pipeline_mode<synchronous>, transform_indices = @transform_18, window_bounds = array<i64: 1, 32>}, {transform_indices = @transform_19, window_bounds = array<i64: 8, 32>}, {transform_indices = @transform_20, window_bounds = array<i64: 8, 32>}, {transform_indices = @transform_21, window_bounds = array<i64: 8, 1>}]} {
    %c0 = arith.constant 0 : index
    %c0_0 = arith.constant 0 : index
    %0 = vector.load %arg1[%c0, %c0_0] : memref<8x32xbf16, #tpu.memory_space<vmem>>, vector<8x32xbf16>
    %c0_1 = arith.constant 0 : index
    %c0_2 = arith.constant 0 : index
    %1 = vector.load %arg2[%c0_1, %c0_2] : memref<8x32xbf16, #tpu.memory_space<vmem>>, vector<8x32xbf16>
    %c0_3 = arith.constant 0 : index
    %c0_4 = arith.constant 0 : index
    %2 = vector.load %arg3[%c0_3, %c0_4] : memref<32x64xbf16, #tpu.memory_space<vmem>>, vector<32x64xbf16>
    %cst = arith.constant dense<0.000000e+00> : vector<8x64xf32>
    %3 = tpu.matmul %0, %2, %cst {dimension_numbers = #tpu.dot_dimension_numbers<[1], [0], [0], [1], [0, 0, 1, 1], [], []>} : vector<8x32xbf16>, vector<32x64xbf16>, vector<8x64xf32> -> vector<8x64xf32>
    %c0_5 = arith.constant 0 : index
    %c0_6 = arith.constant 0 : index
    %4 = vector.load %arg4[%c0_5, %c0_6] : memref<1x64xf32, #tpu.memory_space<vmem>>, vector<1x64xf32>
    %5 = vector.broadcast %4 : vector<1x64xf32> to vector<8x64xf32>
    %6 = arith.addf %3, %5 : vector<8x64xf32>
    %7 = arith.mulf %6, %6 : vector<8x64xf32>
    %c0_7 = arith.constant 0 : index
    %c0_8 = arith.constant 0 : index
    %8 = vector.load %arg6[%c0_7, %c0_8] : memref<64x4xf32, #tpu.memory_space<vmem>>, vector<64x4xf32>
    %cst_9 = arith.constant dense<0.000000e+00> : vector<8x4xf32>
    %9 = tpu.matmul %7, %8, %cst_9 {dimension_numbers = #tpu.dot_dimension_numbers<[1], [0], [0], [1], [0, 0, 1, 1], [], []>} : vector<8x64xf32>, vector<64x4xf32>, vector<8x4xf32> -> vector<8x4xf32>
    %cst_10 = arith.constant 1.000000e-24 : f32
    %10 = vector.broadcast %cst_10 : f32 to vector<8x4xf32>
    %11 = arith.maximumf %9, %10 : vector<8x4xf32>
    %12 = math.rsqrt %11 : vector<8x4xf32>
    %c0_11 = arith.constant 0 : index
    %c0_12 = arith.constant 0 : index
    %13 = vector.load %arg7[%c0_11, %c0_12] : memref<4x64xf32, #tpu.memory_space<vmem>>, vector<4x64xf32>
    %cst_13 = arith.constant dense<0.000000e+00> : vector<8x64xf32>
    %14 = tpu.matmul %12, %13, %cst_13 {dimension_numbers = #tpu.dot_dimension_numbers<[1], [0], [0], [1], [0, 0, 1, 1], [], []>} : vector<8x4xf32>, vector<4x64xf32>, vector<8x64xf32> -> vector<8x64xf32>
    %15 = arith.mulf %6, %14 : vector<8x64xf32>
    %16 = arith.truncf %15 : vector<8x64xf32> to vector<8x64xbf16>
    %c0_14 = arith.constant 0 : index
    %c0_15 = arith.constant 0 : index
    %17 = vector.load %arg5[%c0_14, %c0_15] : memref<64x64xbf16, #tpu.memory_space<vmem>>, vector<64x64xbf16>
    %cst_16 = arith.constant dense<0.000000e+00> : vector<8x64xf32>
    %18 = tpu.matmul %16, %17, %cst_16 {dimension_numbers = #tpu.dot_dimension_numbers<[1], [0], [0], [1], [0, 0, 1, 1], [], []>} : vector<8x64xbf16>, vector<64x64xbf16>, vector<8x64xf32> -> vector<8x64xf32>
    %cst_17 = arith.constant 1.600000e+01 : f32
    %19 = vector.broadcast %cst_17 : f32 to vector<8x64xf32>
    %20 = arith.mulf %19, %18 : vector<8x64xf32>
    %cst_18 = arith.constant 1.600000e+01 : f32
    %21 = vector.broadcast %cst_18 : f32 to vector<8x64xf32>
    %22 = arith.subf %20, %21 : vector<8x64xf32>
    %23 = math.exp %22 : vector<8x64xf32>
    %c0_19 = arith.constant 0 : index
    %c0_20 = arith.constant 0 : index
    %24 = vector.load %arg8[%c0_19, %c0_20] : memref<64x4xf32, #tpu.memory_space<vmem>>, vector<64x4xf32>
    %cst_21 = arith.constant dense<0.000000e+00> : vector<8x4xf32>
    %25 = tpu.matmul %23, %24, %cst_21 {dimension_numbers = #tpu.dot_dimension_numbers<[1], [0], [0], [1], [0, 0, 1, 1], [], []>} : vector<8x64xf32>, vector<64x4xf32>, vector<8x4xf32> -> vector<8x4xf32>
    %26 = tpu.reciprocal %25 {approx = true} : vector<8x4xf32> -> vector<8x4xf32>
    %c0_22 = arith.constant 0 : index
    %c0_23 = arith.constant 0 : index
    %27 = vector.load %arg9[%c0_22, %c0_23] : memref<4x64xf32, #tpu.memory_space<vmem>>, vector<4x64xf32>
    %cst_24 = arith.constant dense<0.000000e+00> : vector<8x64xf32>
    %28 = tpu.matmul %26, %27, %cst_24 {dimension_numbers = #tpu.dot_dimension_numbers<[1], [0], [0], [1], [0, 0, 1, 1], [], []>} : vector<8x4xf32>, vector<4x64xf32>, vector<8x64xf32> -> vector<8x64xf32>
    %29 = arith.mulf %23, %28 : vector<8x64xf32>
    %30 = arith.truncf %29 : vector<8x64xf32> to vector<8x64xbf16>
    %c0_25 = arith.constant 0 : index
    %c0_26 = arith.constant 0 : index
    %31 = vector.load %arg10[%c0_25, %c0_26] : memref<64x32xbf16, #tpu.memory_space<vmem>>, vector<64x32xbf16>
    %cst_27 = arith.constant dense<0.000000e+00> : vector<8x32xf32>
    %32 = tpu.matmul %30, %31, %cst_27 {dimension_numbers = #tpu.dot_dimension_numbers<[1], [0], [0], [1], [0, 0, 1, 1], [], []>} : vector<8x64xbf16>, vector<64x32xbf16>, vector<8x32xf32> -> vector<8x32xf32>
    %c0_28 = arith.constant 0 : index
    %c0_29 = arith.constant 0 : index
    %33 = vector.load %arg11[%c0_28, %c0_29] : memref<1x32xf32, #tpu.memory_space<vmem>>, vector<1x32xf32>
    %34 = vector.broadcast %33 : vector<1x32xf32> to vector<8x32xf32>
    %35 = arith.addf %32, %34 : vector<8x32xf32>
    %cst_30 = arith.constant dense<0.000000e+00> : vector<8xf32>
    %36 = vector.multi_reduction <add>, %35, %cst_30 [1] : vector<8x32xf32> to vector<8xf32>
    %37 = vector.shape_cast %36 : vector<8xf32> to vector<8x1xf32>
    %cst_31 = arith.constant 3.200000e+01 : f32
    %38 = vector.broadcast %cst_31 : f32 to vector<8x1xf32>
    %39 = arith.divf %37, %38 : vector<8x1xf32>
    %40 = vector.broadcast %39 : vector<8x1xf32> to vector<8x32xf32>
    %41 = arith.subf %35, %40 : vector<8x32xf32>
    %42 = arith.mulf %41, %41 : vector<8x32xf32>
    %cst_32 = arith.constant dense<0.000000e+00> : vector<8xf32>
    %43 = vector.multi_reduction <add>, %42, %cst_32 [1] : vector<8x32xf32> to vector<8xf32>
    %44 = vector.shape_cast %43 : vector<8xf32> to vector<8x1xf32>
    %cst_33 = arith.constant 3.200000e+01 : f32
    %45 = vector.broadcast %cst_33 : f32 to vector<8x1xf32>
    %46 = arith.divf %44, %45 : vector<8x1xf32>
    %47 = vector.broadcast %39 : vector<8x1xf32> to vector<8x32xf32>
    %48 = arith.subf %35, %47 : vector<8x32xf32>
    %cst_34 = arith.constant 9.99999974E-6 : f32
    %49 = vector.broadcast %cst_34 : f32 to vector<8x1xf32>
    %50 = arith.addf %46, %49 : vector<8x1xf32>
    %51 = math.rsqrt %50 : vector<8x1xf32>
    %52 = vector.broadcast %51 : vector<8x1xf32> to vector<8x32xf32>
    %53 = arith.mulf %48, %52 : vector<8x32xf32>
    %c0_35 = arith.constant 0 : index
    %c0_36 = arith.constant 0 : index
    %54 = vector.load %arg12[%c0_35, %c0_36] : memref<1x32xf32, #tpu.memory_space<vmem>>, vector<1x32xf32>
    %55 = vector.broadcast %54 : vector<1x32xf32> to vector<8x32xf32>
    %56 = arith.mulf %53, %55 : vector<8x32xf32>
    %c0_37 = arith.constant 0 : index
    %c0_38 = arith.constant 0 : index
    %57 = vector.load %arg13[%c0_37, %c0_38] : memref<1x32xf32, #tpu.memory_space<vmem>>, vector<1x32xf32>
    %58 = vector.broadcast %57 : vector<1x32xf32> to vector<8x32xf32>
    %59 = arith.addf %56, %58 : vector<8x32xf32>
    %c0_39 = arith.constant 0 : index
    %c0_40 = arith.constant 0 : index
    %60 = vector.load %arg20[%c0_39, %c0_40] : memref<8x32xf32, #tpu.memory_space<vmem>>, vector<8x32xf32>
    tpu.vector_store %arg20[%c0_39, %c0_40], %59 {strides = array<i32>} : memref<8x32xf32, #tpu.memory_space<vmem>>, vector<8x32xf32>,
    %c0_41 = arith.constant 0 : index
    %c0_42 = arith.constant 0 : index
    %61 = vector.load %arg14[%c0_41, %c0_42] : memref<32x32xbf16, #tpu.memory_space<vmem>>, vector<32x32xbf16>
    %cst_43 = arith.constant dense<0.000000e+00> : vector<8x32xf32>
    %62 = tpu.matmul %1, %61, %cst_43 {dimension_numbers = #tpu.dot_dimension_numbers<[1], [0], [0], [1], [0, 0, 1, 1], [], []>} : vector<8x32xbf16>, vector<32x32xbf16>, vector<8x32xf32> -> vector<8x32xf32>
    %c0_44 = arith.constant 0 : index
    %c0_45 = arith.constant 0 : index
    %63 = vector.load %arg15[%c0_44, %c0_45] : memref<1x32xf32, #tpu.memory_space<vmem>>, vector<1x32xf32>
    %64 = vector.broadcast %63 : vector<1x32xf32> to vector<8x32xf32>
    %65 = arith.addf %62, %64 : vector<8x32xf32>
    %66 = arith.mulf %65, %65 : vector<8x32xf32>
    %cst_46 = arith.constant dense<0.000000e+00> : vector<8xf32>
    %67 = vector.multi_reduction <add>, %66, %cst_46 [1] : vector<8x32xf32> to vector<8xf32>
    %68 = vector.shape_cast %67 : vector<8xf32> to vector<8x1xf32>
    %cst_47 = arith.constant 1.000000e-24 : f32
    %69 = vector.broadcast %cst_47 : f32 to vector<8x1xf32>
    %70 = arith.maximumf %68, %69 : vector<8x1xf32>
    %71 = math.rsqrt %70 : vector<8x1xf32>
    %72 = vector.broadcast %71 : vector<8x1xf32> to vector<8x32xf32>
    %73 = arith.mulf %65, %72 : vector<8x32xf32>
    %74 = arith.truncf %73 : vector<8x32xf32> to vector<8x32xbf16>
    %c0_48 = arith.constant 0 : index
    %c0_49 = arith.constant 0 : index
    %75 = vector.load %arg16[%c0_48, %c0_49] : memref<32x16xbf16, #tpu.memory_space<vmem>>, vector<32x16xbf16>
    %cst_50 = arith.constant dense<0.000000e+00> : vector<8x16xf32>
    %76 = tpu.matmul %74, %75, %cst_50 {dimension_numbers = #tpu.dot_dimension_numbers<[1], [0], [0], [1], [0, 0, 1, 1], [], []>} : vector<8x32xbf16>, vector<32x16xbf16>, vector<8x16xf32> -> vector<8x16xf32>
    %cst_51 = arith.constant 1.600000e+01 : f32
    %77 = vector.broadcast %cst_51 : f32 to vector<8x16xf32>
    %78 = arith.mulf %77, %76 : vector<8x16xf32>
    %cst_52 = arith.constant 1.600000e+01 : f32
    %79 = vector.broadcast %cst_52 : f32 to vector<8x16xf32>
    %80 = arith.subf %78, %79 : vector<8x16xf32>
    %81 = math.exp %80 : vector<8x16xf32>
    %cst_53 = arith.constant dense<0.000000e+00> : vector<8xf32>
    %82 = vector.multi_reduction <add>, %81, %cst_53 [1] : vector<8x16xf32> to vector<8xf32>
    %83 = vector.shape_cast %82 : vector<8xf32> to vector<8x1xf32>
    %84 = tpu.reciprocal %83 {approx = true} : vector<8x1xf32> -> vector<8x1xf32>
    %85 = vector.broadcast %84 : vector<8x1xf32> to vector<8x16xf32>
    %86 = arith.mulf %81, %85 : vector<8x16xf32>
    %87 = arith.truncf %86 : vector<8x16xf32> to vector<8x16xbf16>
    %c0_54 = arith.constant 0 : index
    %c0_55 = arith.constant 0 : index
    %88 = vector.load %arg17[%c0_54, %c0_55] : memref<16x32xbf16, #tpu.memory_space<vmem>>, vector<16x32xbf16>
    %cst_56 = arith.constant dense<0.000000e+00> : vector<8x32xf32>
    %89 = tpu.matmul %87, %88, %cst_56 {dimension_numbers = #tpu.dot_dimension_numbers<[1], [0], [0], [1], [0, 0, 1, 1], [], []>} : vector<8x16xbf16>, vector<16x32xbf16>, vector<8x32xf32> -> vector<8x32xf32>
    %90 = arith.extf %1 : vector<8x32xbf16> to vector<8x32xf32>
    %91 = arith.mulf %89, %89 : vector<8x32xf32>
    %cst_57 = arith.constant dense<0.000000e+00> : vector<8xf32>
    %92 = vector.multi_reduction <add>, %91, %cst_57 [1] : vector<8x32xf32> to vector<8xf32>
    %93 = vector.shape_cast %92 : vector<8xf32> to vector<8x1xf32>
    %cst_58 = arith.constant 1.000000e-24 : f32
    %94 = vector.broadcast %cst_58 : f32 to vector<8x1xf32>
    %95 = arith.maximumf %93, %94 : vector<8x1xf32>
    %96 = math.rsqrt %95 : vector<8x1xf32>
    %97 = vector.broadcast %96 : vector<8x1xf32> to vector<8x32xf32>
    %98 = arith.mulf %89, %97 : vector<8x32xf32>
    %99 = arith.mulf %90, %90 : vector<8x32xf32>
    %cst_59 = arith.constant dense<0.000000e+00> : vector<8xf32>
    %100 = vector.multi_reduction <add>, %99, %cst_59 [1] : vector<8x32xf32> to vector<8xf32>
    %101 = vector.shape_cast %100 : vector<8xf32> to vector<8x1xf32>
    %cst_60 = arith.constant 1.000000e-24 : f32
    %102 = vector.broadcast %cst_60 : f32 to vector<8x1xf32>
    %103 = arith.maximumf %101, %102 : vector<8x1xf32>
    %104 = math.rsqrt %103 : vector<8x1xf32>
    %105 = vector.broadcast %104 : vector<8x1xf32> to vector<8x32xf32>
    %106 = arith.mulf %90, %105 : vector<8x32xf32>
    %107 = arith.mulf %98, %106 : vector<8x32xf32>
    %cst_61 = arith.constant dense<0.000000e+00> : vector<8xf32>
    %108 = vector.multi_reduction <add>, %107, %cst_61 [1] : vector<8x32xf32> to vector<8xf32>
    %109 = vector.shape_cast %108 : vector<8xf32> to vector<8x1xf32>
    %cst_62 = arith.constant 1.000000e+00 : f32
    %110 = vector.broadcast %cst_62 : f32 to vector<8x1xf32>
    %111 = arith.subf %110, %109 : vector<8x1xf32>
    %c0_63 = arith.constant 0 : index
    %c0_64 = arith.constant 0 : index
    %112 = vector.load %arg22[%c0_63, %c0_64] : memref<8x1xf32, #tpu.memory_space<vmem>>, vector<8x1xf32>
    tpu.vector_store %arg22[%c0_63, %c0_64], %111 {strides = array<i32>} : memref<8x1xf32, #tpu.memory_space<vmem>>, vector<8x1xf32>,
    %cst_65 = arith.constant dense<0.000000e+00> : vector<8xf32>
    %113 = vector.multi_reduction <add>, %89, %cst_65 [1] : vector<8x32xf32> to vector<8xf32>
    %114 = vector.shape_cast %113 : vector<8xf32> to vector<8x1xf32>
    %cst_66 = arith.constant 3.200000e+01 : f32
    %115 = vector.broadcast %cst_66 : f32 to vector<8x1xf32>
    %116 = arith.divf %114, %115 : vector<8x1xf32>
    %117 = vector.broadcast %116 : vector<8x1xf32> to vector<8x32xf32>
    %118 = arith.subf %89, %117 : vector<8x32xf32>
    %119 = arith.mulf %118, %118 : vector<8x32xf32>
    %cst_67 = arith.constant dense<0.000000e+00> : vector<8xf32>
    %120 = vector.multi_reduction <add>, %119, %cst_67 [1] : vector<8x32xf32> to vector<8xf32>
    %121 = vector.shape_cast %120 : vector<8xf32> to vector<8x1xf32>
    %cst_68 = arith.constant 3.200000e+01 : f32
    %122 = vector.broadcast %cst_68 : f32 to vector<8x1xf32>
    %123 = arith.divf %121, %122 : vector<8x1xf32>
    %124 = vector.broadcast %116 : vector<8x1xf32> to vector<8x32xf32>
    %125 = arith.subf %89, %124 : vector<8x32xf32>
    %cst_69 = arith.constant 9.99999974E-6 : f32
    %126 = vector.broadcast %cst_69 : f32 to vector<8x1xf32>
    %127 = arith.addf %123, %126 : vector<8x1xf32>
    %128 = math.rsqrt %127 : vector<8x1xf32>
    %129 = vector.broadcast %128 : vector<8x1xf32> to vector<8x32xf32>
    %130 = arith.mulf %125, %129 : vector<8x32xf32>
    %c0_70 = arith.constant 0 : index
    %c0_71 = arith.constant 0 : index
    %131 = vector.load %arg18[%c0_70, %c0_71] : memref<1x32xf32, #tpu.memory_space<vmem>>, vector<1x32xf32>
    %132 = vector.broadcast %131 : vector<1x32xf32> to vector<8x32xf32>
    %133 = arith.mulf %130, %132 : vector<8x32xf32>
    %c0_72 = arith.constant 0 : index
    %c0_73 = arith.constant 0 : index
    %134 = vector.load %arg19[%c0_72, %c0_73] : memref<1x32xf32, #tpu.memory_space<vmem>>, vector<1x32xf32>
    %135 = vector.broadcast %134 : vector<1x32xf32> to vector<8x32xf32>
    %136 = arith.addf %133, %135 : vector<8x32xf32>
    %c0_74 = arith.constant 0 : index
    %c0_75 = arith.constant 0 : index
    %137 = vector.load %arg21[%c0_74, %c0_75] : memref<8x32xf32, #tpu.memory_space<vmem>>, vector<8x32xf32>
    tpu.vector_store %arg21[%c0_74, %c0_75], %136 {strides = array<i32>} : memref<8x32xf32, #tpu.memory_space<vmem>>, vector<8x32xf32>,
    return
  }
  func.func @transform_0(%arg0: i32) -> (i32, i32) {
    %c0_i32 = arith.constant 0 : i32
    %c0_i32_0 = arith.constant 0 : i32
    return %arg0, %c0_i32 : i32, i32
  }
  func.func @transform_1(%arg0: i32) -> (i32, i32) {
    %c0_i32 = arith.constant 0 : i32
    %c0_i32_0 = arith.constant 0 : i32
    return %arg0, %c0_i32 : i32, i32
  }
  func.func @transform_2(%arg0: i32) -> (i32, i32) {
    %c0_i32 = arith.constant 0 : i32
    %c0_i32_0 = arith.constant 0 : i32
    %c0_i32_1 = arith.constant 0 : i32
    return %c0_i32, %c0_i32_0 : i32, i32
  }
  func.func @transform_3(%arg0: i32) -> (i32, i32) {
    %c0_i32 = arith.constant 0 : i32
    %c0_i32_0 = arith.constant 0 : i32
    %c0_i32_1 = arith.constant 0 : i32
    return %c0_i32, %c0_i32_0 : i32, i32
  }
  func.func @transform_4(%arg0: i32) -> (i32, i32) {
    %c0_i32 = arith.constant 0 : i32
    %c0_i32_0 = arith.constant 0 : i32
    %c0_i32_1 = arith.constant 0 : i32
    return %c0_i32, %c0_i32_0 : i32, i32
  }
  func.func @transform_5(%arg0: i32) -> (i32, i32) {
    %c0_i32 = arith.constant 0 : i32
    %c0_i32_0 = arith.constant 0 : i32
    %c0_i32_1 = arith.constant 0 : i32
    return %c0_i32, %c0_i32_0 : i32, i32
  }
  func.func @transform_6(%arg0: i32) -> (i32, i32) {
    %c0_i32 = arith.constant 0 : i32
    %c0_i32_0 = arith.constant 0 : i32
    %c0_i32_1 = arith.constant 0 : i32
    return %c0_i32, %c0_i32_0 : i32, i32
  }
  func.func @transform_7(%arg0: i32) -> (i32, i32) {
    %c0_i32 = arith.constant 0 : i32
    %c0_i32_0 = arith.constant 0 : i32
    %c0_i32_1 = arith.constant 0 : i32
    return %c0_i32, %c0_i32_0 : i32, i32
  }
  func.func @transform_8(%arg0: i32) -> (i32, i32) {
    %c0_i32 = arith.constant 0 : i32
    %c0_i32_0 = arith.constant 0 : i32
    %c0_i32_1 = arith.constant 0 : i32
    return %c0_i32, %c0_i32_0 : i32, i32
  }
  func.func @transform_9(%arg0: i32) -> (i32, i32) {
    %c0_i32 = arith.constant 0 : i32
    %c0_i32_0 = arith.constant 0 : i32
    %c0_i32_1 = arith.constant 0 : i32
    return %c0_i32, %c0_i32_0 : i32, i32
  }
  func.func @transform_10(%arg0: i32) -> (i32, i32) {
    %c0_i32 = arith.constant 0 : i32
    %c0_i32_0 = arith.constant 0 : i32
    %c0_i32_1 = arith.constant 0 : i32
    return %c0_i32, %c0_i32_0 : i32, i32
  }
  func.func @transform_11(%arg0: i32) -> (i32, i32) {
    %c0_i32 = arith.constant 0 : i32
    %c0_i32_0 = arith.constant 0 : i32
    %c0_i32_1 = arith.constant 0 : i32
    return %c0_i32, %c0_i32_0 : i32, i32
  }
  func.func @transform_12(%arg0: i32) -> (i32, i32) {
    %c0_i32 = arith.constant 0 : i32
    %c0_i32_0 = arith.constant 0 : i32
    %c0_i32_1 = arith.constant 0 : i32
    return %c0_i32, %c0_i32_0 : i32, i32
  }
  func.func @transform_13(%arg0: i32) -> (i32, i32) {
    %c0_i32 = arith.constant 0 : i32
    %c0_i32_0 = arith.constant 0 : i32
    %c0_i32_1 = arith.constant 0 : i32
    return %c0_i32, %c0_i32_0 : i32, i32
  }
  func.func @transform_14(%arg0: i32) -> (i32, i32) {
    %c0_i32 = arith.constant 0 : i32
    %c0_i32_0 = arith.constant 0 : i32
    %c0_i32_1 = arith.constant 0 : i32
    return %c0_i32, %c0_i32_0 : i32, i32
  }
  func.func @transform_15(%arg0: i32) -> (i32, i32) {
    %c0_i32 = arith.constant 0 : i32
    %c0_i32_0 = arith.constant 0 : i32
    %c0_i32_1 = arith.constant 0 : i32
    return %c0_i32, %c0_i32_0 : i32, i32
  }
  func.func @transform_16(%arg0: i32) -> (i32, i32) {
    %c0_i32 = arith.constant 0 : i32
    %c0_i32_0 = arith.constant 0 : i32
    %c0_i32_1 = arith.constant 0 : i32
    return %c0_i32, %c0_i32_0 : i32, i32
  }
  func.func @transform_17(%arg0: i32) -> (i32, i32) {
    %c0_i32 = arith.constant 0 : i32
    %c0_i32_0 = arith.constant 0 : i32
    %c0_i32_1 = arith.constant 0 : i32
    return %c0_i32, %c0_i32_0 : i32, i32
  }
  func.func @transform_18(%arg0: i32) -> (i32, i32) {
    %c0_i32 = arith.constant 0 : i32
    %c0_i32_0 = arith.constant 0 : i32
    %c0_i32_1 = arith.constant 0 : i32
    return %c0_i32, %c0_i32_0 : i32, i32
  }
  func.func @transform_19(%arg0: i32) -> (i32, i32) {
    %c0_i32 = arith.constant 0 : i32
    %c0_i32_0 = arith.constant 0 : i32
    return %arg0, %c0_i32 : i32, i32
  }
  func.func @transform_20(%arg0: i32) -> (i32, i32) {
    %c0_i32 = arith.constant 0 : i32
    %c0_i32_0 = arith.constant 0 : i32
    return %arg0, %c0_i32 : i32, i32
  }
  func.func @transform_21(%arg0: i32) -> (i32, i32) {
    %c0_i32 = arith.constant 0 : i32
    %c0_i32_0 = arith.constant 0 : i32
    return %arg0, %c0_i32 : i32, i32
  }
}

</mosaic_0001>

<bundles_post_ra>
// kernel: tpu_custom_call.1
= control target key start
LH: loop header
LB: loop body
LE: loop exit
PB: predicated region body
PF: predicated region fallthrough
CT: control target
= control target key end

     0   :  { %s2060_s0 = inlined_call_operand.vmem [shape: bf16[16,32], index: 0, kind: input, shape index: {}]   ;;  %s2061_s1 = inlined_call_operand.vmem [shape: bf16[16,32], index: 1, kind: input, shape index: {}]   ;;  %s2062_s2 = inlined_call_operand.vmem [shape: bf16[32,64], index: 2, kind: input, shape index: {}]   ;;  %s2063_s3 = inlined_call_operand.vmem [shape: f32[1,64], index: 3, kind: input, shape index: {}]   ;;  %s2064_s4 = inlined_call_operand.vmem [shape: bf16[64,64], index: 4, kind: input, shape index: {}]   ;;  %s2065_s5 = inlined_call_operand.vmem [shape: f32[64,4], index: 5, kind: input, shape index: {}]   ;;  %s2066_s6 = inlined_call_operand.vmem [shape: f32[4,64], index: 6, kind: input, shape index: {}]   ;;  %s2067_s7 = inlined_call_operand.vmem [shape: f32[64,4], index: 7, kind: input, shape index: {}]   ;;  %s2068_s8 = inlined_call_operand.vmem [shape: f32[4,64], index: 8, kind: input, shape index: {}]   ;;  %s2069_s9 = inlined_call_operand.vmem [shape: bf16[64,32], index: 9, kind: input, shape index: {}]   ;;  %s2070_s10 = inlined_call_operand.vmem [shape: f32[1,32], index: 10, kind: input, shape index: {}]   ;;  %s2071_s11 = inlined_call_operand.vmem [shape: f32[1,32], index: 11, kind: input, shape index: {}]   ;;  %s2072_s12 = inlined_call_operand.vmem [shape: f32[1,32], index: 12, kind: input, shape index: {}]   ;;  %s2073_s13 = inlined_call_operand.vmem [shape: bf16[32,32], index: 13, kind: input, shape index: {}]   ;;  %s2074_s14 = inlined_call_operand.vmem [shape: f32[1,32], index: 14, kind: input, shape index: {}]   ;;  %s2075_s15 = inlined_call_operand.vmem [shape: bf16[32,16], index: 15, kind: input, shape index: {}]   ;;  %s2076_s16 = inlined_call_operand.vmem [shape: bf16[16,32], index: 16, kind: input, shape index: {}]   ;;  %s2077_s17 = inlined_call_operand.vmem [shape: f32[1,32], index: 17, kind: input, shape index: {}]   ;;  %s2078_s18 = inlined_call_operand.vmem [shape: f32[1,32], index: 18, kind: input, shape index: {}]   ;;  %s2079_s19 = inlined_call_operand.hbm [shape: f32[16,32], index: 19, kind: output, shape index: {0}]   ;;  %s2080_s20 = inlined_call_operand.hbm [shape: f32[16,32], index: 20, kind: output, shape index: {1}]   ;;  %s2081_s21 = inlined_call_operand.vmem [shape: f32[16,1], index: 21, kind: output, shape index: {2}]  }
   0x1   :  { %2095 = sst [smem:[#allocation14_spill]] %s2060_s0 }
   0x2   :  { %2096 = sst [smem:[#allocation15_spill]] %s2061_s1 }
   0x3   :  { %2097 = sst [smem:[#allocation16_spill]] %s2062_s2 }
   0x4   :  { %2098 = sst [smem:[#allocation17_spill]] %s2063_s3 }
   0x5   :  { %2099 = sst [smem:[#allocation18_spill]] %s2064_s4 }
   0x6   :  { %2100 = sst [smem:[#allocation19_spill]] %s2065_s5 }
   0x7   :  { %2101 = sst [smem:[#allocation20_spill]] %s2066_s6 }
   0x8   :  { %2102 = sst [smem:[#allocation21_spill]] %s2067_s7 }
   0x9   :  { %2103 = sst [smem:[#allocation22_spill]] %s2068_s8 }
   0xa   :  { %2104 = sst [smem:[#allocation23_spill]] %s2069_s9 }
   0xb   :  { %2105 = sst [smem:[#allocation24_spill]] %s2081_s21 }
   0xc   :  { %27 = vsyncpa [#allocation3], 0 }
   0xd   :  { %29 = vsyncpa [#allocation3 + $0x1], 0 }
   0xe   :  { %30 = vsyncpa [#allocation5], 0 }
   0xf   :  { %32 = vsyncpa [#allocation5 + $0x1], 0  ;;  %s1758_s2 = smov 0   ;;  %s1760_s25 = smov 0  }
  0x10   :  { %s1762_s26 = smov 0   ;;  %s1764_s27 = smov 0  }
  0x11 LB: > { %2106 = sst [smem:[#allocation8_spill]] %s1633_s2  ;;  %s1779_s3 = sadd.s32 4294967295, %s1645_s27   ;;  %s1645_s27 = sphi %s1764_s27, %s2133_s27   ;;  %s1641_s26 = sphi %s1762_s26, %s2135_s26   ;;  %s1637_s25 = sphi %s1760_s25, %s2137_s25   ;;  %s1633_s2 = sphi %s1758_s2, %s2136_s2  }
  0x12   : > { %2107 = sst [smem:[#allocation9_spill]] %s1641_s26  ;;  %s1373_s28 = sadd.s32 4294967294, %s1645_s27  }
  0x13   : > { %2108 = sst [smem:[#allocation10_spill]] %s1645_s27  ;;  %s1783_s29 = sadd.s32 1, %s1645_s27  }
  0x14   : > { %2109 = sst [smem:[#allocation11_spill]] %s1783_s29  ;;  %s454_s0 = sadd.s32 1, %s1641_s26 }
  0x15   : > { %s451_s4 = ssub.s32 %s1645_s27, %s1783_s29  ;;  %p464_p0 = scmp.ne.s32.totalorder %s1641_s26, %s1637_s25 }
  0x16   : > { %p452_p1 = scmp.eq.s32.totalorder %s451_s4, 0  ;;  %p465_p2 = scmp.eq.s32.totalorder %s1779_s3, 1 }
  0x17   : > { %p470_p3 = scmp.ne.s32.totalorder %s1637_s25, %s1633_s2  ;;  %p471_p4 = scmp.eq.s32.totalorder %s1373_s28, 1 }
  0x18   : > { %s1794_s30 = scalar_select %p452_p1, %s1641_s26, %s454_s0  }
  0x19   : > { %p1796_p5 = por %p465_p2, %p464_p0  ;;  %p1800_p6 = por %p471_p4, %p470_p3 }
  0x1a   : > { %2110 = sst [smem:[#allocation12_spill]] %s1794_s30  ;;  %p1376_p7 = scmp.ge.s32.totalorder %s1645_s27, 1 }
  0x1b   : > { %s2112_s22 = scalar_select %p1800_p6, 1, 0 }
  0x1c   : > { %p606_p8 = scmp.lt.s32.totalorder %s1645_s27, 3 }
  0x1d   : > { %2113 = sst [smem:[#allocation13_spill]] %s2112_s22 }
  0x1e   : > { %p607_p9 = pnand %p1376_p7, %p606_p8 }
  0x1f   : > { %s2114_s24 = sld [smem:[#allocation16_spill]] (!%p607_p9)  ;;  %p678_p10 = scmp.lt.s32.totalorder (!%p607_p9), %s1779_s3, 1 }
  0x20   : > { %610 = sbr.rel (%p607_p9) target bundleno = 1557 (0x615), region = 96  ;;  %s2115_s4 = sld [smem:[#allocation19_spill]] (!%p607_p9) }
  0x21   : > { %s2116_s21 = sld [smem:[#allocation14_spill]] (!%p607_p9) }
  0x22   : > { %s2117_s23 = sld [smem:[#allocation17_spill]] (!%p607_p9) }
  0x23   : > { %s2118_s6 = sld [smem:[#allocation20_spill]] (!%p607_p9) }
  0x24   : > { %s2120_s7 = sld [smem:[#allocation21_spill]] (!%p607_p9) }
  0x25   : > { %v1463_v0 = vld [vmem:[%s2114_s24 + $0x8] sm:$0xff]  ;;  %v1462_v3 = vld [vmem:[%s2114_s24] sm:$0xff]  ;;  %s1820_s2 = scalar_select %p678_p10, %s1779_s3, 1  ;;  %vm713_vm0 = vcmask 261120   ;;  %vm739_vm1 = vcmask 523264   ;;  %vm779_vm2 = vcmask 1043456  }
  0x26   : > { %v738_v1 = vld [vmem:[%s2115_s4 + $0x38] sm:$0xff]  ;;  %v737_v2 = vld [vmem:[%s2115_s4 + $0x30] sm:$0xff]  ;;  %723 = vmatpush.bf16.msra.mxu0 %v1463_v0  ;;  %v736_v4 = vld [vmem:[%s2115_s4 + $0x28] sm:$0xff]  ;;  %vm775_vm5 = vcmask 31744   ;;  %s2123_s8 = sld [smem:[#allocation22_spill]]  ;;  %vm1099_vm10 = vcmask 130048  }
  0x27   : > { %751 = vmatpush.msra.mxu1 %v738_v1  ;;  %s2091_s28 = sshll.u32 %s1820_s2, 2  ;;  %v735_v5 = vld [vmem:[%s2115_s4 + $0x20] sm:$0xff]  ;;  %v734_v7 = vld [vmem:[%s2115_s4 + $0x18] sm:$0xff]  ;;  %v733_v8 = vld [vmem:[%s2115_s4 + $0x10] sm:$0xff]  ;;  %s2124_s9 = sld [smem:[#allocation23_spill]] }
  0x28   : > { %s681_s29 = scalar_lea.vmem %s2116_s21, %s2091_s28  ;;  %v732_v9 = vld [vmem:[%s2115_s4 + $0x8] sm:$0xff]  ;;  %v731_v10 = vld [vmem:[%s2115_s4] sm:$0xff]  ;;  %s2119_s21 = sld [smem:[#allocation18_spill]] }
  0x29   : > { %752 = vmatpush.msra.mxu1 %v737_v2  ;;  %v691_v6 = vld [vmem:[%s681_s29] sm:$0xf]  ;;  %v1473_v41 = vld [vmem:[%s2073_s13 + $0x8] sm:$0xff]  ;;  %s2121_s28 = sshll.u32 %s1820_s2, 2  ;;  %s2122_s29 = sld [smem:[#allocation15_spill]] }
  0x2a   : > { %724 = vmatpush.bf16.msra.mxu0 %v1462_v3  ;;  %v1522_v11 = vld [vmem:[%s2117_s23] ss:$0 sm:$0xff]  ;;  %v864_v30 = vld [vmem:[%s2120_s7 + $0x38] sm:$0xff]  ;;  %v863_v34 = vld [vmem:[%s2120_s7 + $0x30] sm:$0xff]  ;;  %s2094_s4 = sshll.u32 %s1779_s3, 3 }
  0x2b   : > { %753 = vmatpush.msra.mxu1 %v736_v4  ;;  %v774_v16 = vld [vmem:[%s2118_s6] sm:$0xf]  ;;  %v862_v35 = vld [vmem:[%s2120_s7 + $0x28] sm:$0xff]  ;;  %v860_v37 = vld [vmem:[%s2120_s7 + $0x18] sm:$0xff]  ;;  %s1953_s6 = sand.u32 1, %s1637_s25   ;;  %s1223_s30 = scalar_lea.hbm %s2079_s19, %s2094_s4 }
  0x2c   : > { %1392 = vmatpush.msk.msra.mxu2 %vm779_vm2, %v774_v16  ;;  %v861_v36 = vld [vmem:[%s2120_s7 + $0x20] sm:$0xff]  ;;  %v859_v38 = vld [vmem:[%s2120_s7 + $0x10] sm:$0xff]  ;;  %v858_v39 = vld [vmem:[%s2120_s7 + $0x8] sm:$0xff]  ;;  %s2093_s23 = sshll.u32 %s1953_s6, 3  ;;  %s1204_s1 = scalar_lea.sflag [#allocation3], %s1953_s6 }
  0x2d   : > { %754 = vmatpush.msra.mxu1 %v735_v5  ;;  %1390 = vmatmul.msk.bf16.vlgmr.msra.gmra.mxu0 %vm713_vm0, %v691_v6  ;;  %v857_v40 = vld [vmem:[%s2120_s7] sm:$0xff]  ;;  %v1471_v51 = vld [vmem:[%s2124_s9 + $0x18] sm:$0xff]  ;;  %v1470_v52 = vld [vmem:[%s2124_s9 + $0x10] sm:$0xff]  ;;  %s1964_s0 = scalar_lea.vmem [#allocation2], %s2093_s23 }
  0x2e   : > { %v1467_v17 = vld [vmem:[%s2119_s21 + $0x18] sm:$0xff]  ;;  %v1466_v18 = vld [vmem:[%s2119_s21 + $0x10] sm:$0xff]  ;;  %v1465_v19 = vld [vmem:[%s2119_s21 + $0x8] sm:$0xff]  ;;  %876 = vmatpush.msrb.mxu2 %v864_v30 }
  0x2f   : > { %755 = vmatpush.msra.mxu1 %v734_v7  ;;  %844 = vmatpush.bf16.msra.mxu3 %v1467_v17  ;;  %v1464_v29 = vld [vmem:[%s2119_s21] sm:$0xff]  ;;  %s685_s22 = scalar_lea.vmem %s2122_s29, %s2121_s28  ;;  %v1469_v61 = vld [vmem:[%s2124_s9 + $0x8] sm:$0xff]  ;;  %s1225_s29 = sshll.u32 %s1964_s0, 4  ;;  %s1226_s29 = int_to_ptr.vmem [resolvable:$true] %s1225_s29 }
  0x30   : > { %877 = vmatpush.msrb.mxu2 %v863_v34  ;;  %v1472_v42 = vld [vmem:[%s2073_s13] sm:$0xff]  ;;  %v1475_v63 = vld [vmem:[%s2075_s15 + $0x8] sm:$0xff] }
  0x31   : > { %756 = vmatpush.msra.mxu1 %v733_v8  ;;  %v1905_v49 = vld [vmem:[%s685_s22] sm:$0xf]  ;;  %s1227_s22 = sshll.u32 %s1223_s30, 4  ;;  %s1571_s30 = scalar_lea.hbm %s2079_s19, 16  ;;  %s1228_s22 = int_to_ptr.hbm [resolvable:$true] %s1227_s22 }
  0x32   : > { %878 = vmatpush.msrb.mxu2 %v862_v35  ;;  %v889_v50 = vld [vmem:[%s2123_s8] sm:$0xf]  ;;  %s1565_s27 = sshra.s32 %s1228_s22, 4  ;;  %s1566_s27 = int_to_ptr.hbm [resolvable:$true] %s1565_s27 }
  0x33   : > { %757 = vmatpush.msra.mxu1 %v732_v9  ;;  %845 = vmatpush.bf16.msra.mxu3 %v1466_v18  ;;  %v1523_v54 = vld [vmem:[%s2074_s14] ss:$0 sm:$0xff]  ;;  %s1567_s28 = scalar_lea.hbm %s1566_s27, 8  ;;  %p1572_p0 = scmp.lt.s32.totalorder %s1566_s27, %s2079_s19 }
  0x34   : > { %879 = vmatpush.msrb.mxu2 %v861_v36  ;;  %1413 = vmatpush.msk.msrb.mxu0 %vm779_vm2, %v889_v50  ;;  %v1468_v62 = vld [vmem:[%s2124_s9] sm:$0xff]  ;;  %p1568_p11 = scmp.ne.s32.totalorder %s1566_s27, %s1567_s28  ;;  %p1573_p1 = scmp.lt.s32.totalorder %s1571_s30, %s1567_s28 }
  0x35   : > { %758 = vmatpush.msra.mxu1 %v731_v10  ;;  %v1474_v0 = vld [vmem:[%s2075_s15] sm:$0xff] }
  0x36   : > { %880 = vmatpush.msrb.mxu2 %v860_v37  ;;  %1088 = vmatpush.bf16.msra.mxu0 %v1475_v63  ;;  %v1130_v63 = vunpack.c.l.bf16 %v1905_v49  ;;  %p1569_p12 = pnand %p1568_p11, %p1796_p5  ;;  %p1574_p2 = por %p1573_p1, %p1572_p0 }
  0x37   : > { %846 = vmatpush.bf16.msra.mxu3 %v1465_v19  ;;  %961 = vmatpush.bf16.msrb.mxu1 %v1471_v51 }
  0x38   : > { %881 = vmatpush.msrb.mxu2 %v859_v38  ;;  %p1570_p13 = pneg %p1569_p12 }
  0x3a   : > { %882 = vmatpush.msrb.mxu2 %v858_v39  ;;  %1089 = vmatpush.bf16.msra.mxu0 %v1474_v0  ;;  %p1575_p3 = pnand %p1574_p2, %p1570_p13 }
  0x3b   : > { %847 = vmatpush.bf16.msra.mxu3 %v1464_v29  ;;  %962 = vmatpush.bf16.msrb.mxu1 %v1470_v52 }
  0x3c   : > { %883 = vmatpush.msrb.mxu2 %v857_v40 }
  0x3f   : > { %963 = vmatpush.bf16.msrb.mxu1 %v1469_v61 }
  0x43   : > { %964 = vmatpush.bf16.msrb.mxu1 %v1468_v62 }
  0xaa   : > { %v726_v12 = vpop.f32.mrf.mxu0 }
  0xab   : > { %v727_v13 = vadd.f32 %v1522_v11, %v726_v12 }
  0xad   : > { %v730_v14 = vmul.f32 %v727_v13, %v727_v13 }
  0xaf   : > { %1391 = vmatmul.msk.f32.vlgmr.msra.gmra.mxu1 %vm739_vm1, %v730_v14 }
  0xb2   : > { %v728_v15 = vpop.f32.mrf.mxu0 }
  0xb3   : > { %v1524_v15 = vld [vmem:[%s2070_s10] ss:$0 sm:$0xff] }
 0x12c   : > { %v760_v20 = vpop.f32.mrf.mxu1 }
 0x12d   : > { %v763_v21 = vmax.f32 %v760_v20, 1e-24 }
 0x12f   : > { %1529 = vrsqrt.f32 %v763_v21  ;;  %vm770_vm4 = vweird.f32 %v763_v21 }
 0x135   : > { %v1530_v22 = vpop.eup %1529 }
 0x136   : > { %v765_v23 = vmul.f32 %v1530_v22, %v763_v21  ;;  %vm771_vm3 = vweird.f32 %v1530_v22 }
 0x137   : > { %vm772_vm6 = vmor %vm770_vm4, %vm771_vm3 }
 0x138   : > { %v766_v24 = vmul.f32 %v1530_v22, %v765_v23 }
 0x13a   : > { %v767_v25 = vmul.f32 0.5, %v766_v24 }
 0x13c   : > { %v768_v26 = vsub.f32 1.5, %v767_v25 }
 0x13e   : > { %v769_v27 = vmul.f32 %v1530_v22, %v768_v26 }
 0x140   : > { %v773_v28 = vsel %vm772_vm6, %v1530_v22, %v769_v27  ;;  %v1647_v27 = vmov 32.0  }
 0x141   : > { %1393 = vmatmul.msk.f32.vlgmr.msra.gmra.mxu2 %vm775_vm5, %v773_v28  ;;  %v1476_v28 = vld [vmem:[%s2076_s16] sm:$0xff] }
 0x142   : > { %1039 = vmatpush.bf16.msra.mxu2 %v1473_v41  ;;  %1124 = vmatpush.bf16.msrb.mxu3 %v1476_v28 }
 0x146   : > { %1040 = vmatpush.bf16.msra.mxu2 %v1472_v42 }
 0x1c4   : > { %v800_v31 = vpop.f32.mrf.mxu2 }
 0x1c5   : > { %v803_v32 = vmul.f32 %v800_v31, %v727_v13 }
 0x1c7   : > { %v804_v33 = vpack.c.bf16 %v803_v32, %v803_v32 }
 0x1c9   : > { %1410 = vmatmul.msk.bf16.vlgmr.msra.gmra.mxu3 %vm739_vm1, %v804_v33 }
 0x24c   : > { %v849_v43 = vpop.f32.mrf.mxu3 }
 0x24d   : > { %v853_v44 = vmul.f32 16.0, %v849_v43 }
 0x24f   : > { %v1411_v45 = vadd.f32 -16.0, %v853_v44 }
 0x251   : > { %v855_v46 = vmul.f32 1.442695, %v1411_v45 }
 0x253   : > { %1531 = vpow2.f32 %v855_v46 }
 0x254   : > { %v851_v47 = vpop.f32.mrf.mxu3 }
 0x259   : > { %v1532_v48 = vpop.eup %1531 }
 0x25a   : > { %1412 = vmatmul.msk.f32.vlgmr.msrb.gmra.mxu2 %vm739_vm1, %v1532_v48 }
 0x262   : > { %1440 = vmatmul.msk.bf16.vlgmr.msra.gmra.mxu2 %vm713_vm0, %v1905_v49 }
 0x2dd   : > { %v885_v53 = vpop.f32.mrf.mxu2 }
 0x2de   : > { %1533 = vrcp.f32 %v885_v53 }
 0x2e4   : > { %v1534_v55 = vpop.eup %1533 }
 0x2e5   : > { %1414 = vmatmul.msk.f32.vlgmr.msrb.gmra.mxu0 %vm775_vm5, %v1534_v55  ;;  %v1042_v56 = vpop.f32.mrf.mxu2 }
 0x2e6   : > { %v1043_v57 = vadd.f32 %v1523_v54, %v1042_v56  ;;  %v1525_v54 = vld [vmem:[%s2071_s11] ss:$0 sm:$0xff] }
 0x2e8   : > { %v1046_v58 = vmul.f32 %v1043_v57, %v1043_v57 }
 0x2ea   : > { %v1047_v59 = vsel %vm713_vm0, %v1046_v58, 0.0 }
 0x2eb   : > { %1048 = vadd.xlane.f32.xlu0 %v1047_v59 }
 0x2ed   : > { %v1044_v60 = vpop.f32.mrf.mxu2 }
 0x35e   : > { %v1049_v1 = vpop.xlane.xlu0 %1048 }
 0x35f   : > { %v1050_v2 = vmax.f32 %v1049_v1, 1e-24  ;;  %v1147_v1 = vmul.f32 %v1130_v63, %v1130_v63 }
 0x361   : > { %1535 = vrsqrt.f32 %v1050_v2  ;;  %vm1057_vm8 = vweird.f32 %v1050_v2 }
 0x362   : > { %v913_v3 = vpop.f32.mrf.mxu0 }
 0x363   : > { %v916_v4 = vmul.f32 %v1532_v48, %v913_v3  ;;  %v1148_v3 = vsel %vm713_vm0, %v1147_v1, 0.0 }
 0x365   : > { %v917_v5 = vpack.c.bf16 %v916_v4, %v916_v4 }
 0x367   : > { %v1536_v6 = vpop.eup %1535  ;;  %1431 = vmatmul.msk.bf16.vlgmr.msrb.gmra.mxu1 %vm739_vm1, %v917_v5 }
 0x368   : > { %v1052_v7 = vmul.f32 %v1536_v6, %v1050_v2  ;;  %vm1058_vm7 = vweird.f32 %v1536_v6 }
 0x369   : > { %vm1059_vm9 = vmor %vm1057_vm8, %vm1058_vm7 }
 0x36a   : > { %v1053_v8 = vmul.f32 %v1536_v6, %v1052_v7 }
 0x36c   : > { %v1054_v9 = vmul.f32 0.5, %v1053_v8 }
 0x36e   : > { %v1055_v10 = vsub.f32 1.5, %v1054_v9 }
 0x370   : > { %v1056_v11 = vmul.f32 %v1536_v6, %v1055_v10 }
 0x372   : > { %v1060_v12 = vsel %vm1059_vm9, %v1536_v6, %v1056_v11 }
 0x373   : > { %v1061_v13 = vmul.f32 %v1060_v12, %v1043_v57  ;;  %v1526_v57 = vld [vmem:[%s2072_s12] ss:$0 sm:$0xff] }
 0x375   : > { %v1062_v14 = vpack.c.bf16 %v1061_v13, %v1061_v13 }
 0x377   : > { %1449 = vmatmul.msk.bf16.vlgmr.msra.gmra.mxu0 %vm713_vm0, %v1062_v14 }
 0x3e4   : > { %v966_v16 = vpop.f32.mrf.mxu1 }
 0x3e5   : > { %v967_v17 = vadd.f32 %v1524_v15, %v966_v16 }
 0x3e7   : > { %v970_v18 = vsel %vm713_vm0, %v967_v17, 0.0 }
 0x3e8   : > { %971 = vadd.xlane.f32.xlu1 %v970_v18 }
 0x3ec   : > { %v968_v19 = vpop.f32.mrf.mxu1 }
 0x3f4   : > { %v1091_v20 = vpop.f32.mrf.mxu0 }
 0x3f5   : > { %v1095_v21 = vmul.f32 16.0, %v1091_v20 }
 0x3f7   : > { %v1450_v22 = vadd.f32 -16.0, %v1095_v21 }
 0x3f9   : > { %v1097_v23 = vmul.f32 1.442695, %v1450_v22 }
 0x3fb   : > { %1537 = vpow2.f32 %v1097_v23 }
 0x3fc   : > { %v1093_v24 = vpop.f32.mrf.mxu0  ;;  %1539 = vrcp.f32 %v1647_v27 }
 0x401   : > { %v1538_v25 = vpop.eup %1537 }
 0x402   : > { %v1100_v26 = vsel %vm1099_vm10, %v1538_v25, 0.0  ;;  %v1540_v29 = vpop.eup %1539 }
 0x403   : > { %1101 = vadd.xlane.f32.xlu0 %v1100_v26  ;;  %v974_v30 = vmul.f32 32.0, %v1540_v29  ;;  %vm978_vm11 = vweird.f32 %v1540_v29 }
 0x405   : > { %v975_v31 = vsub.f32 1.0, %v974_v30 }
 0x407   : > { %v976_v32 = vmul.f32 %v1540_v29, %v975_v31 }
 0x409   : > { %v977_v33 = vadd.f32 %v1540_v29, %v976_v32 }
 0x40b   : > { %v1946_v34 = vsel %vm978_vm11, %v1540_v29, %v977_v33 }
 0x45b   : > { %v972_v35 = vpop.xlane.xlu1 %971 }
 0x45c   : > { %v980_v36 = vmul.f32 %v1946_v34, %v972_v35 }
 0x45e   : > { %v981_v37 = vsub.f32 %v967_v17, %v980_v36 }
 0x460   : > { %v982_v38 = vmul.f32 %v981_v37, %v981_v37 }
 0x462   : > { %v983_v39 = vsel %vm713_vm0, %v982_v38, 0.0 }
 0x463   : > { %984 = vadd.xlane.f32.xlu0 %v983_v39 }
 0x476   : > { %v1102_v40 = vpop.xlane.xlu0 %1101 }
 0x477   : > { %1541 = vrcp.f32 %v1102_v40 }
 0x47d   : > { %v1542_v41 = vpop.eup %1541 }
 0x47e   : > { %v1104_v42 = vmul.f32 %v1542_v41, %v1538_v25 }
 0x480   : > { %v1105_v43 = vpack.c.bf16 %v1104_v42, %v1104_v42 }
 0x482   : > { %1455 = vmatmul.msk.bf16.vlgmr.msrb.gmra.mxu3 %vm1099_vm10, %v1105_v43 }
 0x4d6   : > { %v985_v44 = vpop.xlane.xlu0 %984 }
 0x4d7   : > { %v986_v45 = vmul.f32 %v985_v44, %v1946_v34 }
 0x4d9   : > { %v987_v46 = vadd.f32 1e-05, %v986_v45 }
 0x4db   : > { %1543 = vrsqrt.f32 %v987_v46  ;;  %vm994_vm13 = vweird.f32 %v987_v46 }
 0x4e1   : > { %v1544_v47 = vpop.eup %1543 }
 0x4e2   : > { %v989_v48 = vmul.f32 %v1544_v47, %v987_v46  ;;  %vm995_vm12 = vweird.f32 %v1544_v47 }
 0x4e3   : > { %vm996_vm14 = vmor %vm994_vm13, %vm995_vm12 }
 0x4e4   : > { %v990_v50 = vmul.f32 %v1544_v47, %v989_v48 }
 0x4e6   : > { %v991_v51 = vmul.f32 0.5, %v990_v50 }
 0x4e8   : > { %v992_v52 = vsub.f32 1.5, %v991_v51 }
 0x4ea   : > { %v993_v53 = vmul.f32 %v1544_v47, %v992_v52 }
 0x4ec   : > { %v997_v55 = vsel %vm996_vm14, %v1544_v47, %v993_v53 }
 0x4ed   : > { %v998_v56 = vmul.f32 %v997_v55, %v981_v37 }
 0x4ef   : > { %v1003_v58 = vmul.f32 %v1525_v54, %v998_v56 }
 0x4f1   : > { %v1008_v59 = vadd.f32 %v1526_v57, %v1003_v58 }
 0x4f3   : > { %1009 = vst.msk [vmem:[%s1964_s0] sm:$0xff] %vm713_vm0, %v1008_v59 }
 0x505   : > { %v1968_v60 = vpop.f32.mrf.mxu3 }
 0x506   : > { %v1170_v61 = vsel %vm713_vm0, %v1968_v60, 0.0  ;;  %v1131_v62 = vmul.f32 %v1968_v60, %v1968_v60 }
 0x507   : > { %1171 = vadd.xlane.f32.xlu1 %v1170_v61 }
 0x508   : > { %v1132_v0 = vsel %vm713_vm0, %v1131_v62, 0.0 }
 0x509   : > { %1133 = vadd.xlane.f32.xlu2 %v1132_v0 }
 0x50d   : > { %v1128_v2 = vpop.f32.mrf.mxu3 }
 0x511   : > { %1149 = vadd.xlane.f32.xlu2 %v1148_v3 }
 0x57a   : > { %v1172_v4 = vpop.xlane.xlu1 %1171 }
 0x57b   : > { %v1173_v5 = vmul.f32 %v1172_v4, %v1946_v34 }
 0x57c   : > { %v1134_v6 = vpop.xlane.xlu2 %1133 }
 0x57d   : > { %v1979_v7 = vsub.f32 %v1968_v60, %v1173_v5  ;;  %v1135_v8 = vmax.f32 %v1134_v6, 1e-24 }
 0x57f   : > { %1545 = vrsqrt.f32 %v1135_v8  ;;  %v1175_v49 = vmul.f32 %v1979_v7, %v1979_v7  ;;  %vm1142_vm1 = vweird.f32 %v1135_v8 }
 0x581   : > { %v1176_v9 = vsel %vm713_vm0, %v1175_v49, 0.0 }
 0x582   : > { %1177 = vadd.xlane.f32.xlu1 %v1176_v9 }
 0x584   : > { %v1150_v10 = vpop.xlane.xlu2 %1149 }
 0x585   : > { %v1546_v11 = vpop.eup %1545  ;;  %v1151_v12 = vmax.f32 %v1150_v10, 1e-24 }
 0x586   : > { %v1137_v13 = vmul.f32 %v1546_v11, %v1135_v8  ;;  %vm1143_vm15 = vweird.f32 %v1546_v11 }
 0x587   : > { %1547 = vrsqrt.f32 %v1151_v12  ;;  %vm1991_vm3 = vmor %vm1142_vm1, %vm1143_vm15 }
 0x588   : > { %v1138_v14 = vmul.f32 %v1546_v11, %v1137_v13 }
 0x58a   : > { %v1139_v15 = vmul.f32 0.5, %v1138_v14 }
 0x58c   : > { %v1140_v17 = vsub.f32 1.5, %v1139_v15 }
 0x58d   : > { %v1548_v16 = vpop.eup %1547 }
 0x58e   : > { %v1153_v18 = vmul.f32 %v1548_v16, %v1151_v12  ;;  %v1141_v21 = vmul.f32 %v1546_v11, %v1140_v17  ;;  %vm1159_vm2 = vweird.f32 %v1548_v16 }
 0x590   : > { %v1154_v19 = vmul.f32 %v1548_v16, %v1153_v18 }
 0x592   : > { %v1155_v20 = vmul.f32 0.5, %v1154_v19 }
 0x594   : > { %v1156_v22 = vsub.f32 1.5, %v1155_v20 }
 0x595   : > { %1578 = shalt.err (!%p1575_p3)
}
 0x596   : > { %1477 = dma.vmem_to_hbm [thread:$0]  (%p1796_p5), %s1226_s29, 128, %s1228_s22, %s1204_s1   ;;  %vm1158_vm4 = vweird.f32 %v1151_v12  ;;  %v1145_v24 = vsel %vm1991_vm3, %v1546_v11, %v1141_v21  ;;  %v1157_v25 = vmul.f32 %v1548_v16, %v1156_v22  ;;  %v1527_v41 = vld [vmem:[%s2077_s17] ss:$0 sm:$0xff]  ;;  %vm1168_vm9 = vcmask 7168  }
 0x597   : > { %vm1160_vm5 = vmor %vm1158_vm4, %vm1159_vm2  ;;  %v1146_v27 = vmul.f32 %v1145_v24, %v1968_v60  ;;  %s2127_s29 = sshll.u32 %s1779_s3, 3  ;;  %v1528_v43 = vld [vmem:[%s2078_s18] ss:$0 sm:$0xff]  ;;  %s2128_s0 = sshll.u32 %s1953_s6, 3 }
 0x598   : > { %v1161_v26 = vsel %vm1160_vm5, %v1548_v16, %v1157_v25  ;;  %s1237_s27 = scalar_lea.hbm %s2080_s20, %s2127_s29  ;;  %s671_s30 = scalar_lea.vmem [#allocation4], %s2128_s0 }
 0x599   : > { %v1162_v28 = vmul.f32 %v1161_v26, %v1130_v63  ;;  %s1239_s7 = sshll.u32 %s671_s30, 4  ;;  %s1241_s8 = sshll.u32 %s1237_s27, 4  ;;  %s1240_s7 = int_to_ptr.vmem [resolvable:$true] %s1239_s7  ;;  %s1242_s8 = int_to_ptr.hbm [resolvable:$true] %s1241_s8 }
 0x59a   : > { %s1381_s23 = sshll.u32 %s1820_s2, 3  ;;  %s2129_s29 = sld [smem:[#allocation24_spill]] }
 0x59b   : > { %v1163_v29 = vmul.f32 %v1162_v28, %v1146_v27  ;;  %s1209_s1 = scalar_lea.sflag [#allocation5], %s1953_s6  ;;  %s1593_s28 = sshra.s32 %s1242_s8, 4  ;;  %s1594_s28 = int_to_ptr.hbm [resolvable:$true] %s1593_s28 }
 0x59c   : > { %s1595_s26 = scalar_lea.hbm %s1594_s28, 8  ;;  %s1599_s0 = scalar_lea.hbm %s2080_s20, 16 }
 0x59d   : > { %v1164_v30 = vsel %vm713_vm0, %v1163_v29, 0.0  ;;  %p1596_p4 = scmp.ne.s32.totalorder %s1594_s28, %s1595_s26  ;;  %p1600_p9 = scmp.lt.s32.totalorder %s1594_s28, %s2080_s20 }
 0x59e   : > { %1165 = vadd.xlane.f32.xlu2 %v1164_v30  ;;  %p1601_p10 = scmp.lt.s32.totalorder %s1599_s0, %s1595_s26 }
 0x59f   : > { %p1597_p7 = pnand %p1596_p4, %p1796_p5 }
 0x5a0   : > { %s689_s22 = scalar_lea.vmem %s2129_s29, %s1381_s23  ;;  %p1602_p11 = por %p1601_p10, %p1600_p9 }
 0x5a1   : > { %p1598_p8 = pneg %p1597_p7 }
 0x5a3   : > { %p1603_p12 = pnand %p1602_p11, %p1598_p8 }
 0x5f5   : > { %v1178_v31 = vpop.xlane.xlu1 %1177 }
 0x5f6   : > { %v1179_v32 = vmul.f32 %v1178_v31, %v1946_v34 }
 0x5f8   : > { %v1180_v33 = vadd.f32 1e-05, %v1179_v32 }
 0x5fa   : > { %1549 = vrsqrt.f32 %v1180_v33  ;;  %vm1187_vm7 = vweird.f32 %v1180_v33 }
 0x600   : > { %v1550_v35 = vpop.eup %1549 }
 0x601   : > { %v1182_v36 = vmul.f32 %v1550_v35, %v1180_v33  ;;  %vm1188_vm6 = vweird.f32 %v1550_v35 }
 0x602   : > { %vm1189_vm8 = vmor %vm1187_vm7, %vm1188_vm6 }
 0x603   : > { %v1183_v37 = vmul.f32 %v1550_v35, %v1182_v36 }
 0x605   : > { %v1184_v38 = vmul.f32 0.5, %v1183_v37 }
 0x607   : > { %v1185_v39 = vsub.f32 1.5, %v1184_v38 }
 0x609   : > { %v1186_v40 = vmul.f32 %v1550_v35, %v1185_v39 }
 0x60b   : > { %v1190_v34 = vsel %vm1189_vm8, %v1550_v35, %v1186_v40 }
 0x60c   : > { %v1191_v42 = vmul.f32 %v1190_v34, %v1979_v7 }
 0x60e   : > { %v1196_v44 = vmul.f32 %v1527_v41, %v1191_v42 }
 0x610   : > { %v1201_v45 = vadd.f32 %v1528_v43, %v1196_v44 }
 0x611   : > { %v1166_v46 = vpop.xlane.xlu2 %1165 }
 0x612   : > { %v1167_v47 = vsub.f32 1.0, %v1166_v46  ;;  %1202 = vst.msk [vmem:[%s671_s30] sm:$0xff] %vm713_vm0, %v1201_v45 }
 0x613   : > { %1606 = shalt.err (!%p1603_p12)
}
 0x614   : > { %1478 = dma.vmem_to_hbm [thread:$0]  (%p1796_p5), %s1240_s7, 128, %s1242_s8, %s1209_s1   ;;  %1169 = vst.msk [vmem:[%s689_s22] sm:$0xff] %vm1168_vm9, %v1167_v47 }
 0x615 PF: > { %s2130_s6 = sld [smem:[#allocation10_spill]] }
 0x616   : > { %s2131_s30 = sld [smem:[#allocation8_spill]] }
 0x61b   : > { %p1488_p13 = scmp.ge.s32.totalorder %s2130_s6, 2 }
 0x61c   : > { %s1256_s4 = sand.u32 1, %s2131_s30  }
 0x61d   : > { %p1482_p0 = pnand %p1488_p13, %p1800_p6  ;;  %s1257_s9 = scalar_lea.sflag [#allocation3], %s1256_s4 }
 0x61f   : > { %p1483_p1 = pneg %p1482_p0 }
 0x621   : > { %1624 = dma.done.wait (%p1483_p1), %s1257_s9, 128  }
 0x622   : > { %1626 = vsyncadd (%p1483_p1), %s1257_s9, 4294967168  ;;  %s1267_s29 = scalar_lea.sflag [#allocation5], %s1256_s4 }
 0x623   : > { %1628 = dma.done.wait (%p1483_p1), %s1267_s29, 128  }
 0x624   : > { %1630 = vsyncadd (%p1483_p1), %s1267_s29, 4294967168  ;;  %s2133_s27 = sld [smem:[#allocation11_spill]]  ;;  %s2136_s2 = smov %s1637_s25 }
 0x625   : > { %s2134_s7 = sld [smem:[#allocation9_spill]] }
 0x626   : > { %s2135_s26 = sld [smem:[#allocation12_spill]] }
 0x62a   : > { %p35_p5 = scmp.ge.s32.totalorder %s2133_s27, 4  }
 0x62b   : > { %s2137_s25 = smov %s2134_s7 }
 0x62c   :  { %37 = sbr.rel (!%p35_p5) target bundleno = 17 (0x11), region = 163 }
 0x631   :  { %1280 = vsyncpa [#allocation3], 1 }
 0x632   :  { %1282 = vsyncpa [#allocation3 + $0x1], 1 }
 0x633   :  { %1283 = vsyncpa [#allocation5], 1 }
 0x634   :  { %1285 = vsyncpa [#allocation5 + $0x1], 1 }

</bundles_post_ra>
